<compile_context>
chip_gen: v5e
topology: v5e:2x2
jax: 0.10.0
libtpu: 0.0.40
codegen_flags: <defaults>
</compile_context>

<pallas_src>
import math
import jax
import jax.numpy as jnp
from jax.experimental import pallas as pl
from jax.experimental.pallas import tpu as pltpu


def _nsp_kernel(x_ref, wt_ref, b_ref, o_ref):
    # x_ref: [TB, D], wt_ref: [D, 2] (pre-transposed), b_ref: [1, 2], o_ref: [TB, 2]
    acc = jnp.dot(x_ref[...], wt_ref[...], preferred_element_type=jnp.float32)
    o_ref[...] = (acc + b_ref[...].astype(jnp.float32)).astype(o_ref.dtype)


def _round_up(v, m):
    return ((v + m - 1) // m) * m


def next_sentence_pred(x, weight, bias, *, block_batch=2048):
    """x: [B, D], weight: [2, D], bias: [2] -> logits [B, 2] (dtype of x)."""
    B, D = x.shape
    out_dtype = x.dtype
    x_eb = jnp.dtype(x.dtype).itemsize
    w_eb = jnp.dtype(weight.dtype).itemsize
    o_eb = jnp.dtype(out_dtype).itemsize

    # Sublane packing of X's dtype: 8 rows for 32-bit, 16 for 16-bit, 32 for 8-bit.
    sub = 8 * (4 // x_eb)

    # Pre-transpose the weight in the wrapper ([2, D] -> [D, 2]): MXU RHS is [K, N].
    wt = weight.T
    b2d = bias.reshape(1, 2)

    if B <= sub:
        # Single (possibly ragged) tile: block equals the full batch dim (legal).
        TB = B
        num_tiles = 1
    else:
        # VMEM budget for the double-buffered X stream. 24 MiB keeps us well inside
        # v7x's 64 MiB physical VMEM even for wide D; v5e/v6e have more headroom.
        x_stream_budget = 24 * 1024 * 1024
        tb_vmem_cap = max(sub, (x_stream_budget // (2 * D * x_eb)) // sub * sub)
        tb_cap = max(sub, min(_round_up(block_batch, sub), tb_vmem_cap))
        # Force >= 2 tiles (when batch allows) so v7x's second TensorCore has work.
        num_tiles = max(pl.cdiv(B, tb_cap), 2 if B >= 2 * sub else 1)
        TB = _round_up(pl.cdiv(B, num_tiles), sub)
        num_tiles = pl.cdiv(B, TB)

    # Advisory cost for XLA's scheduler (per-operand dtypes).
    cost = pl.CostEstimate(
        flops=2 * B * D * 2,
        transcendentals=0,
        bytes_accessed=(B * D * x_eb
                        + 2 * D * w_eb
                        + 2 * jnp.dtype(bias.dtype).itemsize
                        + B * 2 * o_eb),
    )

    # Raise scoped VMEM so larger tiles are allowed on v5e (16 MiB default) while
    # staying safely under v7x's 64 MiB physical VMEM.
    vmem_needed = (2 * TB * D * x_eb       # double-buffered X stream
                   + 2 * TB * 2 * o_eb     # double-buffered output tile
                   + D * 2 * w_eb + 16)    # resident W.T + bias
    vmem_limit = int(min(48 * 1024 * 1024,
                         max(32 * 1024 * 1024, 2 * vmem_needed)))

    out = pl.pallas_call(
        _nsp_kernel,
        out_shape=jax.ShapeDtypeStruct((B, 2), out_dtype),
        grid_spec=pltpu.PrefetchScalarGridSpec(
            num_scalar_prefetch=0,
            grid=(num_tiles,),
            in_specs=[
                pl.BlockSpec((TB, D), lambda i: (i, 0)),   # stream X tiles
                pl.BlockSpec((D, 2), lambda i: (0, 0)),    # W.T resident
                pl.BlockSpec((1, 2), lambda i: (0, 0)),    # bias resident
            ],
            out_specs=pl.BlockSpec((TB, 2), lambda i: (i, 0)),
        ),
        compiler_params=pltpu.CompilerParams(
            dimension_semantics=("parallel",),
            vmem_limit_bytes=vmem_limit,
        ),
        cost_estimate=cost,
    )(x, wt, b2d)
    return out


if __name__ == "__main__":
    key = jax.random.PRNGKey(0)
    k_x, k_w, k_b, k_x2 = jax.random.split(key, 4)

    batch = 8
    num_inputs = 32  # hidden size fed to the NSP head

    # Deterministic init mirroring nn.Linear's U(-1/sqrt(fan_in), 1/sqrt(fan_in)).
    bound = 1.0 / math.sqrt(num_inputs)
    weight = jax.random.uniform(k_w, (2, num_inputs), jnp.float32, -bound, bound)
    bias = jax.random.uniform(k_b, (2,), jnp.float32, -bound, bound)

    # Main check (single-tile path).
    x = jax.random.normal(k_x, (batch, num_inputs), jnp.float32)
    out = jax.block_until_ready(next_sentence_pred(x, weight, bias))
    ref = x @ weight.T + bias
    assert out.shape == (batch, 2)
    assert jnp.allclose(out, ref, atol=1e-5, rtol=1e-5)

    # Multi-tile + ragged-last-tile path (no wrapper-side padding of X).
    x2 = jax.random.normal(k_x2, (20, num_inputs), jnp.float32)
    out2 = jax.block_until_ready(next_sentence_pred(x2, weight, bias, block_batch=16))
    ref2 = x2 @ weight.T + bias
    assert out2.shape == (20, 2)
    assert jnp.allclose(out2, ref2, atol=1e-5, rtol=1e-5)

    print("KERNEL_OK")
</pallas_src>

<mosaic_0001>
module attributes {stable_mosaic.version = 11 : i64} {
  func.func @_nsp_kernel(%arg0: i32, %arg1: memref<8x32xf32, #tpu.memory_space<vmem>>, %arg2: memref<32x2xf32, #tpu.memory_space<vmem>>, %arg3: memref<1x2xf32, #tpu.memory_space<vmem>>, %arg4: memref<8x2xf32, #tpu.memory_space<vmem>>) attributes {dimension_semantics = [#tpu.dimension_semantics<parallel>], iteration_bounds = array<i64: 1>, scalar_prefetch = 0 : i64, scratch_operands = 0 : i64, tpu.core_type = #tpu.core_type<tc>, window_params = [{transform_indices = @transform_0, window_bounds = array<i64: 8, 32>}, {pipeline_mode = #tpu.pipeline_mode<synchronous>, transform_indices = @transform_1, window_bounds = array<i64: 32, 2>}, {pipeline_mode = #tpu.pipeline_mode<synchronous>, transform_indices = @transform_2, window_bounds = array<i64: 1, 2>}, {transform_indices = @transform_3, window_bounds = array<i64: 8, 2>}]} {
    %c0 = arith.constant 0 : index
    %c0_0 = arith.constant 0 : index
    %0 = vector.load %arg1[%c0, %c0_0] : memref<8x32xf32, #tpu.memory_space<vmem>>, vector<8x32xf32>
    %c0_1 = arith.constant 0 : index
    %c0_2 = arith.constant 0 : index
    %1 = vector.load %arg2[%c0_1, %c0_2] : memref<32x2xf32, #tpu.memory_space<vmem>>, vector<32x2xf32>
    %cst = arith.constant dense<0.000000e+00> : vector<8x2xf32>
    %2 = tpu.matmul %0, %1, %cst {dimension_numbers = #tpu.dot_dimension_numbers<[1], [0], [0], [1], [0, 0, 1, 1], [], []>} : vector<8x32xf32>, vector<32x2xf32>, vector<8x2xf32> -> vector<8x2xf32>
    %c0_3 = arith.constant 0 : index
    %c0_4 = arith.constant 0 : index
    %3 = vector.load %arg3[%c0_3, %c0_4] : memref<1x2xf32, #tpu.memory_space<vmem>>, vector<1x2xf32>
    %4 = vector.broadcast %3 : vector<1x2xf32> to vector<8x2xf32>
    %5 = arith.addf %2, %4 : vector<8x2xf32>
    %c0_5 = arith.constant 0 : index
    %c0_6 = arith.constant 0 : index
    %6 = vector.load %arg4[%c0_5, %c0_6] : memref<8x2xf32, #tpu.memory_space<vmem>>, vector<8x2xf32>
    tpu.vector_store %arg4[%c0_5, %c0_6], %5 {strides = array<i32>} : memref<8x2xf32, #tpu.memory_space<vmem>>, vector<8x2xf32>,
    return
  }
  func.func @transform_0(%arg0: i32) -> (i32, i32) {
    %c0_i32 = arith.constant 0 : i32
    %c0_i32_0 = arith.constant 0 : i32
    return %arg0, %c0_i32 : i32, i32
  }
  func.func @transform_1(%arg0: i32) -> (i32, i32) {
    %c0_i32 = arith.constant 0 : i32
    %c0_i32_0 = arith.constant 0 : i32
    %c0_i32_1 = arith.constant 0 : i32
    return %c0_i32, %c0_i32_0 : i32, i32
  }
  func.func @transform_2(%arg0: i32) -> (i32, i32) {
    %c0_i32 = arith.constant 0 : i32
    %c0_i32_0 = arith.constant 0 : i32
    %c0_i32_1 = arith.constant 0 : i32
    return %c0_i32, %c0_i32_0 : i32, i32
  }
  func.func @transform_3(%arg0: i32) -> (i32, i32) {
    %c0_i32 = arith.constant 0 : i32
    %c0_i32_0 = arith.constant 0 : i32
    return %arg0, %c0_i32 : i32, i32
  }
}

</mosaic_0001>

<bundles_post_ra>
// kernel: tpu_custom_call.1
= control target key start
LH: loop header
LB: loop body
LE: loop exit
PB: predicated region body
PF: predicated region fallthrough
CT: control target
= control target key end

     0   :  { %vm23_vm0 = vcmask 261120   ;;  %vm47_vm1 = vcmask 15360   ;;  %s96_s1 = inlined_call_operand.vmem [shape: f32[32,2], index: 1, kind: input, shape index: {}]   ;;  %s97_s2 = inlined_call_operand.vmem [shape: f32[1,2], index: 2, kind: input, shape index: {}]   ;;  %s98_s0 = inlined_call_operand.vmem [shape: f32[8,32], index: 0, kind: input, shape index: {}]   ;;  %s99_s3 = inlined_call_operand.vmem [shape: f32[8,2], index: 3, kind: output, shape index: {}]  }
   0x1   :  { %v18_v0 = vld [vmem:[%s96_s1 + $0x18] sm:$0xff]  ;;  %v17_v1 = vld [vmem:[%s96_s1 + $0x10] sm:$0xff]  ;;  %v16_v2 = vld [vmem:[%s96_s1 + $0x8] sm:$0xff] }
   0x2   :  { %39 = vmatpush.msra.mxu0 %v18_v0  ;;  %v15_v3 = vld [vmem:[%s96_s1] sm:$0xff] }
   0x3   :  { %v14_v4 = vld [vmem:[%s98_s0] sm:$0xff] }
   0x4   :  { %40 = vmatpush.msra.mxu0 %v17_v1  ;;  %v54_v5 = vld [vmem:[%s97_s2] ss:$0 sm:$0xff] }
   0x6   :  { %41 = vmatpush.msra.mxu0 %v16_v2 }
   0x8   :  { %42 = vmatpush.msra.mxu0 %v15_v3 }
   0x9   :  { %53 = vmatmul.msk.f32.vlgmr.msra.gmra.mxu0 %vm23_vm0, %v14_v4 }
  0x86   :  { %v44_v6 = vpop.f32.mrf.mxu0 }
  0x87   :  { %v45_v7 = vadd.f32 %v54_v5, %v44_v6 }
  0x89   :  { %48 = vst.msk [vmem:[%s99_s3] sm:$0xff] %vm47_vm1, %v45_v7 }

</bundles_post_ra>
